<compile_context>
chip_gen: v5e
topology: v5e:2x2
jax: 0.10.0
libtpu: 0.0.40
codegen_flags: <defaults>
</compile_context>

<pallas_src>
import jax
import jax.numpy as jnp
from jax.experimental import pallas as pl
from jax.experimental.pallas import tpu as pltpu

EPS = 1e-6


def _round_up(n, m):
    return ((n + m - 1) // m) * m


def _vmem_capacity_bytes():
    try:
        return int(pltpu.get_tpu_info().vmem_capacity_bytes)
    except Exception:
        return 128 * 1024 * 1024  # v5e/v6e default if the query is unavailable


def _select_tiling(M, D, itemsize, usable):
    """Pick (tm, tn, weight_buffer_count, footprint_bytes) that fits `usable` VMEM."""

    def footprint(tm, tn, w_bufs):
        return (2 * tm * D * itemsize      # x tiles (double-buffered)
                + 2 * tm * tn * itemsize   # out tiles (double-buffered)
                + w_bufs * D * tn * 2      # bf16 weight
                + 2 * 2 * D * 4            # a_2, b_2
                + 2 * tn * 4               # bias
                + tm * D * 2)              # bf16 `normed` scratch

    def clamp_tm(t):
        t = max(8, min(t, _round_up(M, 8)))
        # Leave at least two row tiles so both v7x TensorCores get work.
        if M > 8 and -(-M // t) < 2:
            t = max(8, _round_up(-(-M // 2), 8))
        return t

    # Path 1: full-width resident weight (DMA'd once per call, single-buffered).
    tm = clamp_tm(256)
    if D % 128 != 0 or footprint(tm, D, 1) <= usable:
        return tm, D, 1, footprint(tm, D, 1)

    # Path 2: column-slab the streamed weight; a taller row tile keeps the arithmetic
    # intensity on the weight stream high enough to feed the v6e/v7x MXU.
    for tm_c in (512, 256, 128, 64, 32, 16, 8):
        tm = clamp_tm(tm_c)
        for tn in (512, 256, 128):
            if D % tn == 0 and footprint(tm, tn, 2) <= usable:
                return tm, tn, 2, footprint(tm, tn, 2)
    tm = clamp_tm(8)
    return tm, 128, 2, footprint(tm, 128, 2)


def sublayer_skip_kernel(x_ref, a2_ref, b2_ref, w_ref, bias_ref, o_ref, normed_ref):
    j = pl.program_id(1)
    d = x_ref.shape[-1]
    tn = o_ref.shape[-1]

    # --- LayerNorm, torch-style (unbiased std, divide by (std + eps)) ---
    # Computed once per row tile and cached in bf16 VMEM scratch; column tiles j > 0
    # skip the full (tm, D) f32 load and both cross-lane reductions.
    @pl.when(j == 0)
    def _():
        x = x_ref[...].astype(jnp.float32)
        mean = jnp.sum(x, axis=-1, keepdims=True) * (1.0 / d)
        xc = x - mean                                             # two-pass: no cancellation
        var = jnp.sum(xc * xc, axis=-1, keepdims=True) * (1.0 / max(d - 1, 1))
        denom = jnp.sqrt(var) + EPS
        r = pl.reciprocal(denom, approx=True)                     # EUP slot
        r = r * (2.0 - denom * r)                                 # one Newton step -> ~exact
        scale = r * a2_ref[...].astype(jnp.float32)               # fold 1/(std+eps) into gain
        normed = xc * scale + b2_ref[...].astype(jnp.float32)
        normed_ref[...] = normed.astype(normed_ref.dtype)

    # --- sublayer: Linear(D, D) on the MXU, bf16 operands / f32 accumulation ---
    y = jnp.dot(normed_ref[...], w_ref[...], preferred_element_type=jnp.float32)
    y = y + bias_ref[...].astype(jnp.float32)

    # --- dropout (eval mode => identity) + residual add on the column slice ---
    if tn == d:  # static: single column tile
        x_res = x_ref[...].astype(jnp.float32)
    else:
        col0 = pl.multiple_of(j * tn, 128)
        x_res = x_ref[:, pl.ds(col0, tn)].astype(jnp.float32)
    o_ref[...] = (x_res + y).astype(o_ref.dtype)


def sublayer_skip_connection(x, a2, b2, w, bias):
    """out = x + Linear(LayerNorm(x)), eval-mode dropout (identity).

    x: [B, S, D]; a2/b2/bias: [1, D]; w: [D, D] (pass bf16 to avoid a per-call cast).
    """
    B, S, D = x.shape
    M = B * S
    x2d = x.reshape(M, D)
    if w.dtype != jnp.bfloat16:
        # Callers should pre-cast once; this avoids a D^2 HBM read+write per call.
        w = w.astype(jnp.bfloat16)

    itemsize = jnp.dtype(x.dtype).itemsize
    usable = int(_vmem_capacity_bytes() * 0.85)          # headroom (v7x: ~54 MiB usable)
    tm, tn, w_bufs, fp_bytes = _select_tiling(M, D, itemsize, usable)
    vmem_limit = int(max(min(fp_bytes * 5 // 4, usable), 32 * 1024 * 1024))

    grid = (-(-M // tm), D // tn)

    def build(weight_spec):
        return pl.pallas_call(
            sublayer_skip_kernel,
            out_shape=jax.ShapeDtypeStruct((M, D), x.dtype),
            grid_spec=pltpu.PrefetchScalarGridSpec(
                num_scalar_prefetch=0,
                grid=grid,
                in_specs=[
                    pl.BlockSpec((tm, D), lambda i, j: (i, 0)),   # x rows (full D for LN)
                    pl.BlockSpec((1, D), lambda i, j: (0, 0)),    # a_2
                    pl.BlockSpec((1, D), lambda i, j: (0, 0)),    # b_2
                    weight_spec,                                  # bf16 weight
                    pl.BlockSpec((1, tn), lambda i, j: (0, j)),   # bias slab
                ],
                out_specs=pl.BlockSpec((tm, tn), lambda i, j: (i, j)),
                scratch_shapes=[pltpu.VMEM((tm, D), jnp.bfloat16)],  # cached `normed`
            ),
            compiler_params=pltpu.CompilerParams(
                dimension_semantics=("parallel", "arbitrary"),
                vmem_limit_bytes=vmem_limit,
            ),
        )

    weight_specs = []
    if w_bufs == 1:
        try:  # resident weight: its block index is constant -> don't double-buffer it
            weight_specs.append(
                pl.BlockSpec((D, tn), lambda i, j: (0, j), pipeline_mode=pl.Buffered(1)))
        except TypeError:
            pass
    weight_specs.append(pl.BlockSpec((D, tn), lambda i, j: (0, j)))

    out2d, err = None, None
    for wspec in weight_specs:
        try:
            out2d = build(wspec)(x2d, a2, b2, w, bias)
            break
        except Exception as e:  # fall back to default buffering if single-buffer rejected
            err = e
    if out2d is None:
        raise err
    return out2d.reshape(B, S, D)


def reference(x, a2, b2, w, bias):
    x32 = x.astype(jnp.float32)
    d = x.shape[-1]
    mean = jnp.mean(x32, axis=-1, keepdims=True)
    diff = x32 - mean
    std = jnp.sqrt(jnp.sum(diff * diff, axis=-1, keepdims=True) / (d - 1))
    normed = a2[0] * diff / (std + EPS) + b2[0]
    return x32 + (normed @ w + bias[0])


if __name__ == "__main__":
    B, S, D = 2, 8, 128   # D a multiple of 128 so stores are lane-dense
    key = jax.random.PRNGKey(0)
    kx, kw, kb = jax.random.split(key, 3)

    x = jax.random.normal(kx, (B, S, D), dtype=jnp.float32)

    # LayerNorm params per __init__: a_2 = ones(D), b_2 = zeros(D)
    a2 = jnp.ones((1, D), dtype=jnp.float32)
    b2 = jnp.zeros((1, D), dtype=jnp.float32)

    # Deterministic sublayer (Linear(D, D)) weights
    w = jax.random.normal(kw, (D, D), dtype=jnp.float32) / jnp.sqrt(D)
    bias = 0.01 * jax.random.normal(kb, (1, D), dtype=jnp.float32)

    w_bf16 = w.astype(jnp.bfloat16)   # cast once, outside the per-call path

    out = sublayer_skip_connection(x, a2, b2, w_bf16, bias)
    out = jax.block_until_ready(out)

    ref = reference(x, a2, b2, w, bias)
    # tolerance dominated by the bf16 weight/activation matmul
    assert jnp.allclose(out, ref, atol=3e-2, rtol=3e-2), "mismatch vs reference"

    print("KERNEL_OK")
</pallas_src>

<mosaic_0001>
module attributes {stable_mosaic.version = 11 : i64} {
  func.func @sublayer_skip_kernel(%arg0: i32, %arg1: i32, %arg2: memref<8x128xf32, #tpu.memory_space<vmem>>, %arg3: memref<1x128xf32, #tpu.memory_space<vmem>>, %arg4: memref<1x128xf32, #tpu.memory_space<vmem>>, %arg5: memref<128x128xbf16, #tpu.memory_space<vmem>>, %arg6: memref<1x128xf32, #tpu.memory_space<vmem>>, %arg7: memref<8x128xf32, #tpu.memory_space<vmem>>, %arg8: memref<8x128xbf16, #tpu.memory_space<vmem>>) attributes {dimension_semantics = [#tpu.dimension_semantics<parallel>, #tpu.dimension_semantics<arbitrary>], iteration_bounds = array<i64: 2, 1>, scalar_prefetch = 0 : i64, scratch_operands = 1 : i64, tpu.core_type = #tpu.core_type<tc>, window_params = [{transform_indices = @transform_0, window_bounds = array<i64: 8, 128>}, {pipeline_mode = #tpu.pipeline_mode<synchronous>, transform_indices = @transform_1, window_bounds = array<i64: 1, 128>}, {pipeline_mode = #tpu.pipeline_mode<synchronous>, transform_indices = @transform_2, window_bounds = array<i64: 1, 128>}, {pipeline_mode = #tpu.pipeline_mode<synchronous>, transform_indices = @transform_3, window_bounds = array<i64: 128, 128>}, {transform_indices = @transform_4, window_bounds = array<i64: 1, 128>}, {transform_indices = @transform_5, window_bounds = array<i64: 8, 128>}]} {
    %c0_i32 = arith.constant 0 : i32
    %0 = arith.cmpi eq, %arg1, %c0_i32 : i32
    %1 = arith.extui %0 : i1 to i32
    %c0_i32_0 = arith.constant 0 : i32
    %2 = arith.cmpi ne, %1, %c0_i32_0 : i32
    scf.if %2 {
      %c0_10 = arith.constant 0 : index
      %c0_11 = arith.constant 0 : index
      %12 = vector.load %arg2[%c0_10, %c0_11] : memref<8x128xf32, #tpu.memory_space<vmem>>, vector<8x128xf32>
      %cst_12 = arith.constant dense<0.000000e+00> : vector<8xf32>
      %13 = vector.multi_reduction <add>, %12, %cst_12 [1] : vector<8x128xf32> to vector<8xf32>
      %14 = vector.shape_cast %13 : vector<8xf32> to vector<8x1xf32>
      %cst_13 = arith.constant 7.812500e-03 : f32
      %15 = vector.broadcast %cst_13 : f32 to vector<8x1xf32>
      %16 = arith.mulf %14, %15 : vector<8x1xf32>
      %17 = vector.broadcast %16 : vector<8x1xf32> to vector<8x128xf32>
      %18 = arith.subf %12, %17 : vector<8x128xf32>
      %19 = arith.mulf %18, %18 : vector<8x128xf32>
      %cst_14 = arith.constant dense<0.000000e+00> : vector<8xf32>
      %20 = vector.multi_reduction <add>, %19, %cst_14 [1] : vector<8x128xf32> to vector<8xf32>
      %21 = vector.shape_cast %20 : vector<8xf32> to vector<8x1xf32>
      %cst_15 = arith.constant 0.00787401571 : f32
      %22 = vector.broadcast %cst_15 : f32 to vector<8x1xf32>
      %23 = arith.mulf %21, %22 : vector<8x1xf32>
      %24 = math.sqrt %23 : vector<8x1xf32>
      %cst_16 = arith.constant 9.99999997E-7 : f32
      %25 = vector.broadcast %cst_16 : f32 to vector<8x1xf32>
      %26 = arith.addf %24, %25 : vector<8x1xf32>
      %27 = tpu.reciprocal %26 {approx = true} : vector<8x1xf32> -> vector<8x1xf32>
      %28 = arith.mulf %26, %27 : vector<8x1xf32>
      %cst_17 = arith.constant 2.000000e+00 : f32
      %29 = vector.broadcast %cst_17 : f32 to vector<8x1xf32>
      %30 = arith.subf %29, %28 : vector<8x1xf32>
      %31 = arith.mulf %27, %30 : vector<8x1xf32>
      %c0_18 = arith.constant 0 : index
      %c0_19 = arith.constant 0 : index
      %32 = vector.load %arg3[%c0_18, %c0_19] : memref<1x128xf32, #tpu.memory_space<vmem>>, vector<1x128xf32>
      %33 = vector.broadcast %31 : vector<8x1xf32> to vector<8x128xf32>
      %34 = vector.broadcast %32 : vector<1x128xf32> to vector<8x128xf32>
      %35 = arith.mulf %33, %34 : vector<8x128xf32>
      %36 = arith.mulf %18, %35 : vector<8x128xf32>
      %c0_20 = arith.constant 0 : index
      %c0_21 = arith.constant 0 : index
      %37 = vector.load %arg4[%c0_20, %c0_21] : memref<1x128xf32, #tpu.memory_space<vmem>>, vector<1x128xf32>
      %38 = vector.broadcast %37 : vector<1x128xf32> to vector<8x128xf32>
      %39 = arith.addf %36, %38 : vector<8x128xf32>
      %40 = arith.truncf %39 : vector<8x128xf32> to vector<8x128xbf16>
      %c0_22 = arith.constant 0 : index
      %c0_23 = arith.constant 0 : index
      %41 = vector.load %arg8[%c0_22, %c0_23] : memref<8x128xbf16, #tpu.memory_space<vmem>>, vector<8x128xbf16>
      tpu.vector_store %arg8[%c0_22, %c0_23], %40 {strides = array<i32>} : memref<8x128xbf16, #tpu.memory_space<vmem>>, vector<8x128xbf16>,
    } else {
    }
    %c0 = arith.constant 0 : index
    %c0_1 = arith.constant 0 : index
    %3 = vector.load %arg8[%c0, %c0_1] : memref<8x128xbf16, #tpu.memory_space<vmem>>, vector<8x128xbf16>
    %c0_2 = arith.constant 0 : index
    %c0_3 = arith.constant 0 : index
    %4 = vector.load %arg5[%c0_2, %c0_3] : memref<128x128xbf16, #tpu.memory_space<vmem>>, vector<128x128xbf16>
    %cst = arith.constant dense<0.000000e+00> : vector<8x128xf32>
    %5 = tpu.matmul %3, %4, %cst {dimension_numbers = #tpu.dot_dimension_numbers<[1], [0], [0], [1], [0, 0, 1, 1], [], []>} : vector<8x128xbf16>, vector<128x128xbf16>, vector<8x128xf32> -> vector<8x128xf32>
    %c0_4 = arith.constant 0 : index
    %c0_5 = arith.constant 0 : index
    %6 = vector.load %arg6[%c0_4, %c0_5] : memref<1x128xf32, #tpu.memory_space<vmem>>, vector<1x128xf32>
    %7 = vector.broadcast %6 : vector<1x128xf32> to vector<8x128xf32>
    %8 = arith.addf %5, %7 : vector<8x128xf32>
    %c0_6 = arith.constant 0 : index
    %c0_7 = arith.constant 0 : index
    %9 = vector.load %arg2[%c0_6, %c0_7] : memref<8x128xf32, #tpu.memory_space<vmem>>, vector<8x128xf32>
    %10 = arith.addf %9, %8 : vector<8x128xf32>
    %c0_8 = arith.constant 0 : index
    %c0_9 = arith.constant 0 : index
    %11 = vector.load %arg7[%c0_8, %c0_9] : memref<8x128xf32, #tpu.memory_space<vmem>>, vector<8x128xf32>
    tpu.vector_store %arg7[%c0_8, %c0_9], %10 {strides = array<i32>} : memref<8x128xf32, #tpu.memory_space<vmem>>, vector<8x128xf32>,
    return
  }
  func.func @transform_0(%arg0: i32, %arg1: i32) -> (i32, i32) {
    %c0_i32 = arith.constant 0 : i32
    %c0_i32_0 = arith.constant 0 : i32
    return %arg0, %c0_i32 : i32, i32
  }
  func.func @transform_1(%arg0: i32, %arg1: i32) -> (i32, i32) {
    %c0_i32 = arith.constant 0 : i32
    %c0_i32_0 = arith.constant 0 : i32
    %c0_i32_1 = arith.constant 0 : i32
    return %c0_i32, %c0_i32_0 : i32, i32
  }
  func.func @transform_2(%arg0: i32, %arg1: i32) -> (i32, i32) {
    %c0_i32 = arith.constant 0 : i32
    %c0_i32_0 = arith.constant 0 : i32
    %c0_i32_1 = arith.constant 0 : i32
    return %c0_i32, %c0_i32_0 : i32, i32
  }
  func.func @transform_3(%arg0: i32, %arg1: i32) -> (i32, i32) {
    %c0_i32 = arith.constant 0 : i32
    %c0_i32_0 = arith.constant 0 : i32
    return %c0_i32, %arg1 : i32, i32
  }
  func.func @transform_4(%arg0: i32, %arg1: i32) -> (i32, i32) {
    %c0_i32 = arith.constant 0 : i32
    %c0_i32_0 = arith.constant 0 : i32
    return %c0_i32, %arg1 : i32, i32
  }
  func.func @transform_5(%arg0: i32, %arg1: i32) -> (i32, i32) {
    %c0_i32 = arith.constant 0 : i32
    return %arg0, %arg1 : i32, i32
  }
}

module attributes {stable_mosaic.version = 11 : i64} {
  func.func @sublayer_skip_kernel(%arg0: i32, %arg1: i32, %arg2: memref<8x128xf32, #tpu.memory_space<vmem>>, %arg3: memref<1x128xf32, #tpu.memory_space<vmem>>, %arg4: memref<1x128xf32, #tpu.memory_space<vmem>>, %arg5: memref<128x128xbf16, #tpu.memory_space<vmem>>, %arg6: memref<1x128xf32, #tpu.memory_space<vmem>>, %arg7: memref<8x128xf32, #tpu.memory_space<vmem>>, %arg8: memref<8x128xbf16, #tpu.memory_space<vmem>>) attributes {dimension_semantics = [#tpu.dimension_semantics<parallel>, #tpu.dimension_semantics<arbitrary>], iteration_bounds = array<i64: 2, 1>, scalar_prefetch = 0 : i64, scratch_operands = 1 : i64, tpu.core_type = #tpu.core_type<tc>, window_params = [{transform_indices = @transform_0, window_bounds = array<i64: 8, 128>}, {pipeline_mode = #tpu.pipeline_mode<synchronous>, transform_indices = @transform_1, window_bounds = array<i64: 1, 128>}, {pipeline_mode = #tpu.pipeline_mode<synchronous>, transform_indices = @transform_2, window_bounds = array<i64: 1, 128>}, {transform_indices = @transform_3, window_bounds = array<i64: 128, 128>}, {transform_indices = @transform_4, window_bounds = array<i64: 1, 128>}, {transform_indices = @transform_5, window_bounds = array<i64: 8, 128>}]} {
    %c0_i32 = arith.constant 0 : i32
    %0 = arith.cmpi eq, %arg1, %c0_i32 : i32
    %1 = arith.extui %0 : i1 to i32
    %c0_i32_0 = arith.constant 0 : i32
    %2 = arith.cmpi ne, %1, %c0_i32_0 : i32
    scf.if %2 {
      %c0_10 = arith.constant 0 : index
      %c0_11 = arith.constant 0 : index
      %12 = vector.load %arg2[%c0_10, %c0_11] : memref<8x128xf32, #tpu.memory_space<vmem>>, vector<8x128xf32>
      %cst_12 = arith.constant dense<0.000000e+00> : vector<8xf32>
      %13 = vector.multi_reduction <add>, %12, %cst_12 [1] : vector<8x128xf32> to vector<8xf32>
      %14 = vector.shape_cast %13 : vector<8xf32> to vector<8x1xf32>
      %cst_13 = arith.constant 7.812500e-03 : f32
      %15 = vector.broadcast %cst_13 : f32 to vector<8x1xf32>
      %16 = arith.mulf %14, %15 : vector<8x1xf32>
      %17 = vector.broadcast %16 : vector<8x1xf32> to vector<8x128xf32>
      %18 = arith.subf %12, %17 : vector<8x128xf32>
      %19 = arith.mulf %18, %18 : vector<8x128xf32>
      %cst_14 = arith.constant dense<0.000000e+00> : vector<8xf32>
      %20 = vector.multi_reduction <add>, %19, %cst_14 [1] : vector<8x128xf32> to vector<8xf32>
      %21 = vector.shape_cast %20 : vector<8xf32> to vector<8x1xf32>
      %cst_15 = arith.constant 0.00787401571 : f32
      %22 = vector.broadcast %cst_15 : f32 to vector<8x1xf32>
      %23 = arith.mulf %21, %22 : vector<8x1xf32>
      %24 = math.sqrt %23 : vector<8x1xf32>
      %cst_16 = arith.constant 9.99999997E-7 : f32
      %25 = vector.broadcast %cst_16 : f32 to vector<8x1xf32>
      %26 = arith.addf %24, %25 : vector<8x1xf32>
      %27 = tpu.reciprocal %26 {approx = true} : vector<8x1xf32> -> vector<8x1xf32>
      %28 = arith.mulf %26, %27 : vector<8x1xf32>
      %cst_17 = arith.constant 2.000000e+00 : f32
      %29 = vector.broadcast %cst_17 : f32 to vector<8x1xf32>
      %30 = arith.subf %29, %28 : vector<8x1xf32>
      %31 = arith.mulf %27, %30 : vector<8x1xf32>
      %c0_18 = arith.constant 0 : index
      %c0_19 = arith.constant 0 : index
      %32 = vector.load %arg3[%c0_18, %c0_19] : memref<1x128xf32, #tpu.memory_space<vmem>>, vector<1x128xf32>
      %33 = vector.broadcast %31 : vector<8x1xf32> to vector<8x128xf32>
      %34 = vector.broadcast %32 : vector<1x128xf32> to vector<8x128xf32>
      %35 = arith.mulf %33, %34 : vector<8x128xf32>
      %36 = arith.mulf %18, %35 : vector<8x128xf32>
      %c0_20 = arith.constant 0 : index
      %c0_21 = arith.constant 0 : index
      %37 = vector.load %arg4[%c0_20, %c0_21] : memref<1x128xf32, #tpu.memory_space<vmem>>, vector<1x128xf32>
      %38 = vector.broadcast %37 : vector<1x128xf32> to vector<8x128xf32>
      %39 = arith.addf %36, %38 : vector<8x128xf32>
      %40 = arith.truncf %39 : vector<8x128xf32> to vector<8x128xbf16>
      %c0_22 = arith.constant 0 : index
      %c0_23 = arith.constant 0 : index
      %41 = vector.load %arg8[%c0_22, %c0_23] : memref<8x128xbf16, #tpu.memory_space<vmem>>, vector<8x128xbf16>
      tpu.vector_store %arg8[%c0_22, %c0_23], %40 {strides = array<i32>} : memref<8x128xbf16, #tpu.memory_space<vmem>>, vector<8x128xbf16>,
    } else {
    }
    %c0 = arith.constant 0 : index
    %c0_1 = arith.constant 0 : index
    %3 = vector.load %arg8[%c0, %c0_1] : memref<8x128xbf16, #tpu.memory_space<vmem>>, vector<8x128xbf16>
    %c0_2 = arith.constant 0 : index
    %c0_3 = arith.constant 0 : index
    %4 = vector.load %arg5[%c0_2, %c0_3] : memref<128x128xbf16, #tpu.memory_space<vmem>>, vector<128x128xbf16>
    %cst = arith.constant dense<0.000000e+00> : vector<8x128xf32>
    %5 = tpu.matmul %3, %4, %cst {dimension_numbers = #tpu.dot_dimension_numbers<[1], [0], [0], [1], [0, 0, 1, 1], [], []>} : vector<8x128xbf16>, vector<128x128xbf16>, vector<8x128xf32> -> vector<8x128xf32>
    %c0_4 = arith.constant 0 : index
    %c0_5 = arith.constant 0 : index
    %6 = vector.load %arg6[%c0_4, %c0_5] : memref<1x128xf32, #tpu.memory_space<vmem>>, vector<1x128xf32>
    %7 = vector.broadcast %6 : vector<1x128xf32> to vector<8x128xf32>
    %8 = arith.addf %5, %7 : vector<8x128xf32>
    %c0_6 = arith.constant 0 : index
    %c0_7 = arith.constant 0 : index
    %9 = vector.load %arg2[%c0_6, %c0_7] : memref<8x128xf32, #tpu.memory_space<vmem>>, vector<8x128xf32>
    %10 = arith.addf %9, %8 : vector<8x128xf32>
    %c0_8 = arith.constant 0 : index
    %c0_9 = arith.constant 0 : index
    %11 = vector.load %arg7[%c0_8, %c0_9] : memref<8x128xf32, #tpu.memory_space<vmem>>, vector<8x128xf32>
    tpu.vector_store %arg7[%c0_8, %c0_9], %10 {strides = array<i32>} : memref<8x128xf32, #tpu.memory_space<vmem>>, vector<8x128xf32>,
    return
  }
  func.func @transform_0(%arg0: i32, %arg1: i32) -> (i32, i32) {
    %c0_i32 = arith.constant 0 : i32
    %c0_i32_0 = arith.constant 0 : i32
    return %arg0, %c0_i32 : i32, i32
  }
  func.func @transform_1(%arg0: i32, %arg1: i32) -> (i32, i32) {
    %c0_i32 = arith.constant 0 : i32
    %c0_i32_0 = arith.constant 0 : i32
    %c0_i32_1 = arith.constant 0 : i32
    return %c0_i32, %c0_i32_0 : i32, i32
  }
  func.func @transform_2(%arg0: i32, %arg1: i32) -> (i32, i32) {
    %c0_i32 = arith.constant 0 : i32
    %c0_i32_0 = arith.constant 0 : i32
    %c0_i32_1 = arith.constant 0 : i32
    return %c0_i32, %c0_i32_0 : i32, i32
  }
  func.func @transform_3(%arg0: i32, %arg1: i32) -> (i32, i32) {
    %c0_i32 = arith.constant 0 : i32
    %c0_i32_0 = arith.constant 0 : i32
    return %c0_i32, %arg1 : i32, i32
  }
  func.func @transform_4(%arg0: i32, %arg1: i32) -> (i32, i32) {
    %c0_i32 = arith.constant 0 : i32
    %c0_i32_0 = arith.constant 0 : i32
    return %c0_i32, %arg1 : i32, i32
  }
  func.func @transform_5(%arg0: i32, %arg1: i32) -> (i32, i32) {
    %c0_i32 = arith.constant 0 : i32
    return %arg0, %arg1 : i32, i32
  }
}

</mosaic_0001>

<bundles_post_ra>
// kernel: tpu_custom_call.1
= control target key start
LH: loop header
LB: loop body
LE: loop exit
PB: predicated region body
PF: predicated region fallthrough
CT: control target
= control target key end

     0   :  { %10 = vsyncpa [#allocation4], 0  ;;  %s1083_s0 = inlined_call_operand.hbm [shape: f32[16,128], index: 0, kind: input, shape index: {}]   ;;  %s1084_s1 = inlined_call_operand.hbm [shape: f32[1,128], index: 1, kind: input, shape index: {}]   ;;  %s1085_s2 = inlined_call_operand.vmem [shape: f32[1,128], index: 2, kind: input, shape index: {}]   ;;  %s1086_s3 = inlined_call_operand.hbm [shape: bf16[128,128], index: 3, kind: input, shape index: {}]   ;;  %s1087_s4 = inlined_call_operand.vmem [shape: f32[1,128], index: 4, kind: input, shape index: {}]   ;;  %s1088_s5 = inlined_call_operand.hbm [shape: f32[16,128], index: 5, kind: output, shape index: {}]  }
   0x1   :  { %12 = vsyncpa [#allocation4 + $0x1], 0 }
   0x2   :  { %13 = vsyncpa [#allocation7], 0 }
   0x3   :  { %14 = vsyncpa [#allocation5], 0 }
   0x4   :  { %16 = vsyncpa [#allocation5 + $0x1], 0  ;;  %s927_s18 = smov 0   ;;  %s929_s19 = smov 0  }
   0x5   :  { %s931_s20 = smov 0   ;;  %s933_s21 = smov 0  }
   0x6   :  { %s935_s22 = smov 0   ;;  %s937_s23 = smov 0  }
   0x7 LB: > { %s565_s24 = sadd.s32 4294967295, %s891_s23   ;;  %s566_s25 = sadd.s32 4294967294, %s891_s23   ;;  %s891_s23 = sphi %s937_s23, %s22_s23   ;;  %s887_s22 = sphi %s935_s22, %s1098_s22   ;;  %s883_s21 = sphi %s933_s21, %s1097_s21   ;;  %s879_s20 = sphi %s931_s20, %s1096_s20   ;;  %s875_s19 = sphi %s929_s19, %s1095_s19   ;;  %s871_s18 = sphi %s927_s18, %s1094_s18  }
   0x8   : > { %p54_p0 = scmp.ne.s32.totalorder %s875_s19, %s871_s18  ;;  %p963_p1 = scmp.eq.s32.totalorder %s565_s24, 0 }
   0x9   : > { %p180_p2 = scmp.eq.s32.totalorder %s566_s25, 1  ;;  %p567_p4 = scmp.ge.s32.totalorder %s891_s23, 1 }
   0xa   : > { %p969_p3 = por %p963_p1, %p54_p0  ;;  %p187_p6 = scmp.lt.s32.totalorder %s891_s23, 3 }
   0xb   : > { %p974_p5 = por %p180_p2, %p54_p0  ;;  %s199_s6 = sshll.u32 %s1084_s1, 4  ;;  %s200_s6 = int_to_ptr.hbm [resolvable:$true] %s199_s6 }
   0xc   : > { %p982_p7 = pnand %p567_p4, %p187_p6  ;;  %p571_p8 = scmp.ge.s32.totalorder %s891_s23, 2 }
   0xd   : > { %s893_s8 = smov [#allocation6]   ;;  %s215_s12 = sshll.u32 %s1086_s3, 4  ;;  %s216_s12 = int_to_ptr.hbm [resolvable:$true] %s215_s12 }
   0xe   : > { %p635_p9 = pneg %p982_p7  ;;  %s201_s9 = sshll.u32 %s893_s8, 4  ;;  %s202_s9 = int_to_ptr.vmem [resolvable:$true] %s201_s9 }
   0xf   : > { %s894_s13 = smov [#allocation8]   ;;  %s895_s15 = smov 64  }
  0x10   : > { %p636_p10 = pnand %p635_p9, %p963_p1  ;;  %s217_s14 = sshll.u32 %s894_s13, 4  ;;  %s218_s14 = int_to_ptr.vmem [resolvable:$true] %s217_s14 }
  0x11   : > { %s896_s16 = smov 4   ;;  %p174_p11 = scmp.eq.s32.totalorder %s565_s24, 1 }
  0x12   : > { %638 = dma.hbm_to_vmem [thread:$0]  (!%p636_p10), %s200_s6, 16, %s202_s9, [#allocation7]  }
  0x13   : > { %641 = dma.hbm_to_vmem [thread:$0]  (!%p636_p10), %s216_s12, 1024, %s218_s14, [#allocation7], %s895_s15, %s895_s15, %s896_s16  }
  0x14   : > { %s34_s17 = sadd.s32 1, %s887_s22  ;;  %s41_s25 = sadd.s32 1, %s879_s20 }
  0x15   : > { %p36_p12 = scmp.ge.s32.totalorder %s34_s17, 2  ;;  %p48_p13 = scmp.ne.s32.totalorder %s879_s20, %s875_s19 }
  0x16   : > { %p49_p0 = scmp.eq.s32.totalorder %s891_s23, 0  ;;  %p652_p4 = scmp.lt.s32.totalorder %s891_s23, 2 }
  0x17   : > { %s1100_s17 = smov (%p36_p12, %s34_s17), 0  ;;  %p1003_p2 = por %p174_p11, %p48_p13 }
  0x18   : > { %s38_s30 = ssub.s32 %s887_s22, %s1100_s17  ;;  %s237_s6 = sand.u32 1, %s879_s20  }
  0x19   : > { %p39_p6 = scmp.eq.s32.totalorder %s38_s30, 0  ;;  %p50_p9 = por %p49_p0, %p48_p13 }
  0x1a   : > { %s572_s8 = sshll.u32 %s237_s6, 3  ;;  %s573_s24 = sshll.u32 %s887_s22, 3 }
  0x1b   : > { %s1013_s9 = scalar_select %p39_p6, %s879_s20, %s41_s25  }
  0x1c   : > { %s245_s12 = scalar_lea.hbm %s1083_s0, %s573_s24  ;;  %s241_s14 = scalar_lea.vmem [#allocation3], %s572_s8 }
  0x1d   : > { %s247_s13 = sshll.u32 %s245_s12, 4  ;;  %s249_s15 = sshll.u32 %s241_s14, 4  ;;  %s248_s13 = int_to_ptr.hbm [resolvable:$true] %s247_s13  ;;  %s250_s15 = int_to_ptr.vmem [resolvable:$true] %s249_s15 }
  0x1e   : > { %p643_p10 = pnand %p652_p4, %p50_p9  ;;  %s238_s16 = scalar_lea.sflag [#allocation4], %s237_s6 }
  0x1f   : > { %258 = sbr.rel (%p982_p7) target bundleno = 466 (0x1d2), region = 40  ;;  %s1023_s25 = sand.u32 (!%p982_p7), 1, %s875_s19  }
  0x20   : > { %645 = dma.hbm_to_vmem [thread:$0]  (!%p643_p10), %s248_s13, 128, %s250_s15, %s238_s16  }
  0x21   : > { %s575_s30 = sshll.u32 (!%p982_p7), %s1023_s25, 3  ;;  %s261_s24 = scalar_lea.sflag (!%p982_p7), [#allocation4], %s1023_s25 }
  0x22   : > { %s264_s8 = scalar_lea.vmem (!%p982_p7), [#allocation3], %s575_s30 }
  0x24   : > { %858 = dma.done.wait (%p969_p3), %s261_s24, 128  }
  0x25   : > { %860 = vsyncadd (%p969_p3), %s261_s24, 4294967168 }
  0x26   : > { %862 = dma.done.wait (%p963_p1), [#allocation7], 1040  }
  0x27   : > { %864 = vsyncadd (%p963_p1), [#allocation7], 4294966256  ;;  %v312_v0 = vld [vmem:[%s264_s8] sm:$0xff]  ;;  %v619_v10 = vld [vmem:[#allocation8 + $0x20] sm:$0xff]  ;;  %s612_s7 = sshll.u32 %s883_s21, 3  ;;  %s304_s14 = scalar_lea.vmem [#allocation9], %s575_s30 }
  0x28   : > { %313 = vadd.xlane.f32.xlu0 %v312_v0  ;;  %v622_v5 = vld [vmem:[#allocation8 + $0x38] sm:$0xff]  ;;  %v621_v6 = vld [vmem:[#allocation8 + $0x30] sm:$0xff]  ;;  %v620_v7 = vld [vmem:[#allocation8 + $0x28] sm:$0xff]  ;;  %s448_s13 = scalar_lea.hbm %s1088_s5, %s612_s7  ;;  %s450_s15 = sshll.u32 %s304_s14, 4  ;;  %s451_s15 = int_to_ptr.vmem [resolvable:$true] %s450_s15 }
  0x29   : > { %420 = vmatpush.bf16.msra.mxu0 %v622_v5  ;;  %v618_v11 = vld [vmem:[#allocation8 + $0x18] sm:$0xff]  ;;  %v617_v13 = vld [vmem:[#allocation8 + $0x10] sm:$0xff]  ;;  %v616_v16 = vld [vmem:[#allocation8 + $0x8] sm:$0xff]  ;;  %s452_s16 = sshll.u32 %s448_s13, 4  ;;  %s437_s21 = scalar_lea.sflag [#allocation5], %s1023_s25  ;;  %s453_s16 = int_to_ptr.hbm [resolvable:$true] %s452_s16 }
  0x2a   : > { %v615_v19 = vld [vmem:[#allocation8] sm:$0xff]  ;;  %v708_v28 = vld [vmem:[#allocation6] ss:$0 sm:$0xff]  ;;  %v709_v32 = vld [vmem:[%s1085_s2] ss:$0 sm:$0xff]  ;;  %s819_s24 = sshra.s32 %s453_s16, 4  ;;  %s820_s24 = int_to_ptr.hbm [resolvable:$true] %s819_s24 }
  0x2b   : > { %v710_v37 = vld [vmem:[%s1087_s4] ss:$0 sm:$0xff]  ;;  %s821_s8 = scalar_lea.hbm %s820_s24, 8  ;;  %s825_s7 = scalar_lea.hbm %s1088_s5, 16 }
  0x2c   : > { %p822_p1 = scmp.ne.s32.totalorder %s820_s24, %s821_s8  ;;  %p826_p11 = scmp.lt.s32.totalorder %s820_s24, %s1088_s5 }
  0x2d   : > { %421 = vmatpush.bf16.msra.mxu0 %v621_v6  ;;  %p827_p12 = scmp.lt.s32.totalorder %s825_s7, %s821_s8 }
  0x2e   : > { %p823_p3 = pnand %p822_p1, %p1003_p2 }
  0x2f   : > { %p828_p13 = por %p827_p12, %p826_p11 }
  0x30   : > { %p824_p7 = pneg %p823_p3 }
  0x31   : > { %422 = vmatpush.bf16.msra.mxu0 %v620_v7 }
  0x32   : > { %p829_p0 = pnand %p828_p13, %p824_p7 }
  0x35   : > { %423 = vmatpush.bf16.msra.mxu0 %v619_v10 }
  0x39   : > { %424 = vmatpush.bf16.msra.mxu0 %v618_v11 }
  0x3d   : > { %425 = vmatpush.bf16.msra.mxu0 %v617_v13 }
  0x41   : > { %426 = vmatpush.bf16.msra.mxu0 %v616_v16 }
  0x45   : > { %427 = vmatpush.bf16.msra.mxu0 %v615_v19 }
  0x9b   : > { %v314_v1 = vpop.xlane.xlu0 %313 }
  0x9c   : > { %v315_v2 = vmul.f32 0.0078125, %v314_v1 }
  0x9e   : > { %v316_v3 = vsub.f32 %v312_v0, %v315_v2 }
  0xa0   : > { %v317_v4 = vmul.f32 %v316_v3, %v316_v3 }
  0xa2   : > { %318 = vadd.xlane.f32.xlu0 %v317_v4 }
 0x115   : > { %v319_v8 = vpop.xlane.xlu0 %318 }
 0x116   : > { %v320_v9 = vmul.f32 0.007874016, %v319_v8 }
 0x118   : > { %711 = vrsqrt.f32 %v320_v9  ;;  %vm328_vm0 = vcmp.eq.f32.partialorder %v320_v9, inf  ;;  %v331_v22 = vand.u32 2147483648, %v320_v9  ;;  %vm330_vm1 = vcmp.eq.f32.partialorder %v320_v9, 0.0 }
 0x11e   : > { %v712_v12 = vpop.eup %711 }
 0x11f   : > { %v322_v14 = vmul.f32 %v712_v12, %v320_v9 }
 0x121   : > { %v323_v15 = vmul.f32 %v712_v12, %v322_v14 }
 0x123   : > { %v324_v17 = vmul.f32 0.5, %v323_v15 }
 0x125   : > { %v325_v18 = vsub.f32 1.5, %v324_v17 }
 0x127   : > { %v326_v20 = vmul.f32 %v712_v12, %v325_v18 }
 0x129   : > { %v327_v21 = vmul.f32 %v326_v20, %v320_v9 }
 0x12b   : > { %v329_v23 = vsel %vm328_vm0, %v320_v9, %v327_v21 }
 0x12c   : > { %v332_v24 = vsel %vm330_vm1, %v331_v22, %v329_v23 }
 0x12d   : > { %v333_v25 = vadd.f32 1e-06, %v332_v24 }
 0x12f   : > { %713 = vrcp.f32 %v333_v25 }
 0x135   : > { %v714_v26 = vpop.eup %713 }
 0x136   : > { %v335_v27 = vmul.f32 %v714_v26, %v333_v25 }
 0x138   : > { %v336_v29 = vsub.f32 2.0, %v335_v27 }
 0x13a   : > { %v337_v30 = vmul.f32 %v714_v26, %v336_v29 }
 0x13c   : > { %v342_v31 = vmul.f32 %v708_v28, %v337_v30 }
 0x13e   : > { %v343_v33 = vmul.f32 %v342_v31, %v316_v3 }
 0x140   : > { %v348_v34 = vadd.f32 %v709_v32, %v343_v33 }
 0x142   : > { %v349_v35 = vpack.c.bf16 %v348_v34, %v348_v34 }
 0x144   : > { %350 = vst [vmem:[#allocation2] sm:$0xf] %v349_v35 }
 0x14b   : > { %v351_v36 = vld [vmem:[#allocation2] sm:$0xf] }
 0x14c   : > { %428 = vmatmul.bf16.vlgmr.msra.gmra.mxu0 %v351_v36 }
 0x1c9   : > { %v429_v38 = vpop.f32.mrf.mxu0 }
 0x1ca   : > { %v430_v39 = vadd.f32 %v710_v37, %v429_v38 }
 0x1cc   : > { %v434_v40 = vadd.f32 %v430_v39, %v312_v0 }
 0x1ce   : > { %435 = vst [vmem:[%s304_s14] sm:$0xff] %v434_v40 }
 0x1cf   : > { %832 = shalt.err (!%p829_p0)
}
 0x1d0   : > { %633 = dma.vmem_to_hbm [thread:$0]  (%p1003_p2), %s451_s15, 128, %s453_s16, %s437_s21  }
 0x1d1   : > { %v431_v41 = vpop.f32.mrf.mxu0 }
 0x1d2 PF: > { %s464_s25 = sand.u32 1, %s871_s18   ;;  %p647_p4 = pnand %p571_p8, %p974_p5 }
 0x1d3   : > { %s465_s10 = scalar_lea.sflag [#allocation5], %s464_s25 }
 0x1d4   : > { %p648_p6 = pneg %p647_p4 }
 0x1d6   : > { %866 = dma.done.wait (%p648_p6), %s465_s10, 128  }
 0x1d7   : > { %868 = vsyncadd (%p648_p6), %s465_s10, 4294967168  ;;  %s22_s23 = sadd.s32 1, %s891_s23   ;;  %s1094_s18 = smov %s875_s19 }
 0x1d8   : > { %p19_p9 = scmp.ge.s32.totalorder %s22_s23, 4   ;;  %s1095_s19 = smov %s879_s20 }
 0x1d9   : > { %s1096_s20 = smov %s1013_s9  ;;  %s1097_s21 = smov %s887_s22 }
 0x1da   : > { %s1098_s22 = smov %s1100_s17  ;;  %21 = sbr.rel (!%p19_p9) target bundleno = 7 (0x7), region = 101 }
 0x1df   :  { %471 = vsyncpa [#allocation4], 1 }
 0x1e0   :  { %473 = vsyncpa [#allocation4 + $0x1], 1 }
 0x1e1   :  { %474 = vsyncpa [#allocation7], 1 }
 0x1e2   :  { %475 = vsyncpa [#allocation5], 1 }
 0x1e3   :  { %477 = vsyncpa [#allocation5 + $0x1], 1 }

// kernel: tpu_custom_call.1
= control target key start
LH: loop header
LB: loop body
LE: loop exit
PB: predicated region body
PF: predicated region fallthrough
CT: control target
= control target key end

     0   :  { %10 = vsyncpa [#allocation4], 0  ;;  %s1083_s0 = inlined_call_operand.hbm [shape: f32[16,128], index: 0, kind: input, shape index: {}]   ;;  %s1084_s1 = inlined_call_operand.hbm [shape: f32[1,128], index: 1, kind: input, shape index: {}]   ;;  %s1085_s2 = inlined_call_operand.vmem [shape: f32[1,128], index: 2, kind: input, shape index: {}]   ;;  %s1086_s3 = inlined_call_operand.hbm [shape: bf16[128,128], index: 3, kind: input, shape index: {}]   ;;  %s1087_s4 = inlined_call_operand.vmem [shape: f32[1,128], index: 4, kind: input, shape index: {}]   ;;  %s1088_s5 = inlined_call_operand.hbm [shape: f32[16,128], index: 5, kind: output, shape index: {}]  }
   0x1   :  { %12 = vsyncpa [#allocation4 + $0x1], 0 }
   0x2   :  { %13 = vsyncpa [#allocation7], 0 }
   0x3   :  { %14 = vsyncpa [#allocation5], 0 }
   0x4   :  { %16 = vsyncpa [#allocation5 + $0x1], 0  ;;  %s927_s18 = smov 0   ;;  %s929_s19 = smov 0  }
   0x5   :  { %s931_s20 = smov 0   ;;  %s933_s21 = smov 0  }
   0x6   :  { %s935_s22 = smov 0   ;;  %s937_s23 = smov 0  }
   0x7 LB: > { %s565_s24 = sadd.s32 4294967295, %s891_s23   ;;  %s566_s25 = sadd.s32 4294967294, %s891_s23   ;;  %s891_s23 = sphi %s937_s23, %s22_s23   ;;  %s887_s22 = sphi %s935_s22, %s1098_s22   ;;  %s883_s21 = sphi %s933_s21, %s1097_s21   ;;  %s879_s20 = sphi %s931_s20, %s1096_s20   ;;  %s875_s19 = sphi %s929_s19, %s1095_s19   ;;  %s871_s18 = sphi %s927_s18, %s1094_s18  }
   0x8   : > { %p54_p0 = scmp.ne.s32.totalorder %s875_s19, %s871_s18  ;;  %p963_p1 = scmp.eq.s32.totalorder %s565_s24, 0 }
   0x9   : > { %p180_p2 = scmp.eq.s32.totalorder %s566_s25, 1  ;;  %p567_p4 = scmp.ge.s32.totalorder %s891_s23, 1 }
   0xa   : > { %p969_p3 = por %p963_p1, %p54_p0  ;;  %p187_p6 = scmp.lt.s32.totalorder %s891_s23, 3 }
   0xb   : > { %p974_p5 = por %p180_p2, %p54_p0  ;;  %s199_s6 = sshll.u32 %s1084_s1, 4  ;;  %s200_s6 = int_to_ptr.hbm [resolvable:$true] %s199_s6 }
   0xc   : > { %p982_p7 = pnand %p567_p4, %p187_p6  ;;  %p571_p8 = scmp.ge.s32.totalorder %s891_s23, 2 }
   0xd   : > { %s893_s8 = smov [#allocation6]   ;;  %s215_s12 = sshll.u32 %s1086_s3, 4  ;;  %s216_s12 = int_to_ptr.hbm [resolvable:$true] %s215_s12 }
   0xe   : > { %p635_p9 = pneg %p982_p7  ;;  %s201_s9 = sshll.u32 %s893_s8, 4  ;;  %s202_s9 = int_to_ptr.vmem [resolvable:$true] %s201_s9 }
   0xf   : > { %s894_s13 = smov [#allocation8]   ;;  %s895_s15 = smov 64  }
  0x10   : > { %p636_p10 = pnand %p635_p9, %p963_p1  ;;  %s217_s14 = sshll.u32 %s894_s13, 4  ;;  %s218_s14 = int_to_ptr.vmem [resolvable:$true] %s217_s14 }
  0x11   : > { %s896_s16 = smov 4   ;;  %p174_p11 = scmp.eq.s32.totalorder %s565_s24, 1 }
  0x12   : > { %638 = dma.hbm_to_vmem [thread:$0]  (!%p636_p10), %s200_s6, 16, %s202_s9, [#allocation7]  }
  0x13   : > { %641 = dma.hbm_to_vmem [thread:$0]  (!%p636_p10), %s216_s12, 1024, %s218_s14, [#allocation7], %s895_s15, %s895_s15, %s896_s16  }
  0x14   : > { %s34_s17 = sadd.s32 1, %s887_s22  ;;  %s41_s25 = sadd.s32 1, %s879_s20 }
  0x15   : > { %p36_p12 = scmp.ge.s32.totalorder %s34_s17, 2  ;;  %p48_p13 = scmp.ne.s32.totalorder %s879_s20, %s875_s19 }
  0x16   : > { %p49_p0 = scmp.eq.s32.totalorder %s891_s23, 0  ;;  %p652_p4 = scmp.lt.s32.totalorder %s891_s23, 2 }
  0x17   : > { %s1100_s17 = smov (%p36_p12, %s34_s17), 0  ;;  %p1003_p2 = por %p174_p11, %p48_p13 }
  0x18   : > { %s38_s30 = ssub.s32 %s887_s22, %s1100_s17  ;;  %s237_s6 = sand.u32 1, %s879_s20  }
  0x19   : > { %p39_p6 = scmp.eq.s32.totalorder %s38_s30, 0  ;;  %p50_p9 = por %p49_p0, %p48_p13 }
  0x1a   : > { %s572_s8 = sshll.u32 %s237_s6, 3  ;;  %s573_s24 = sshll.u32 %s887_s22, 3 }
  0x1b   : > { %s1013_s9 = scalar_select %p39_p6, %s879_s20, %s41_s25  }
  0x1c   : > { %s245_s12 = scalar_lea.hbm %s1083_s0, %s573_s24  ;;  %s241_s14 = scalar_lea.vmem [#allocation3], %s572_s8 }
  0x1d   : > { %s247_s13 = sshll.u32 %s245_s12, 4  ;;  %s249_s15 = sshll.u32 %s241_s14, 4  ;;  %s248_s13 = int_to_ptr.hbm [resolvable:$true] %s247_s13  ;;  %s250_s15 = int_to_ptr.vmem [resolvable:$true] %s249_s15 }
  0x1e   : > { %p643_p10 = pnand %p652_p4, %p50_p9  ;;  %s238_s16 = scalar_lea.sflag [#allocation4], %s237_s6 }
  0x1f   : > { %258 = sbr.rel (%p982_p7) target bundleno = 466 (0x1d2), region = 40  ;;  %s1023_s25 = sand.u32 (!%p982_p7), 1, %s875_s19  }
  0x20   : > { %645 = dma.hbm_to_vmem [thread:$0]  (!%p643_p10), %s248_s13, 128, %s250_s15, %s238_s16  }
  0x21   : > { %s575_s30 = sshll.u32 (!%p982_p7), %s1023_s25, 3  ;;  %s261_s24 = scalar_lea.sflag (!%p982_p7), [#allocation4], %s1023_s25 }
  0x22   : > { %s264_s8 = scalar_lea.vmem (!%p982_p7), [#allocation3], %s575_s30 }
  0x24   : > { %858 = dma.done.wait (%p969_p3), %s261_s24, 128  }
  0x25   : > { %860 = vsyncadd (%p969_p3), %s261_s24, 4294967168 }
  0x26   : > { %862 = dma.done.wait (%p963_p1), [#allocation7], 1040  }
  0x27   : > { %864 = vsyncadd (%p963_p1), [#allocation7], 4294966256  ;;  %v312_v0 = vld [vmem:[%s264_s8] sm:$0xff]  ;;  %v619_v10 = vld [vmem:[#allocation8 + $0x20] sm:$0xff]  ;;  %s612_s7 = sshll.u32 %s883_s21, 3  ;;  %s304_s14 = scalar_lea.vmem [#allocation9], %s575_s30 }
  0x28   : > { %313 = vadd.xlane.f32.xlu0 %v312_v0  ;;  %v622_v5 = vld [vmem:[#allocation8 + $0x38] sm:$0xff]  ;;  %v621_v6 = vld [vmem:[#allocation8 + $0x30] sm:$0xff]  ;;  %v620_v7 = vld [vmem:[#allocation8 + $0x28] sm:$0xff]  ;;  %s448_s13 = scalar_lea.hbm %s1088_s5, %s612_s7  ;;  %s450_s15 = sshll.u32 %s304_s14, 4  ;;  %s451_s15 = int_to_ptr.vmem [resolvable:$true] %s450_s15 }
  0x29   : > { %420 = vmatpush.bf16.msra.mxu0 %v622_v5  ;;  %v618_v11 = vld [vmem:[#allocation8 + $0x18] sm:$0xff]  ;;  %v617_v13 = vld [vmem:[#allocation8 + $0x10] sm:$0xff]  ;;  %v616_v16 = vld [vmem:[#allocation8 + $0x8] sm:$0xff]  ;;  %s452_s16 = sshll.u32 %s448_s13, 4  ;;  %s437_s21 = scalar_lea.sflag [#allocation5], %s1023_s25  ;;  %s453_s16 = int_to_ptr.hbm [resolvable:$true] %s452_s16 }
  0x2a   : > { %v615_v19 = vld [vmem:[#allocation8] sm:$0xff]  ;;  %v708_v28 = vld [vmem:[#allocation6] ss:$0 sm:$0xff]  ;;  %v709_v32 = vld [vmem:[%s1085_s2] ss:$0 sm:$0xff]  ;;  %s819_s24 = sshra.s32 %s453_s16, 4  ;;  %s820_s24 = int_to_ptr.hbm [resolvable:$true] %s819_s24 }
  0x2b   : > { %v710_v37 = vld [vmem:[%s1087_s4] ss:$0 sm:$0xff]  ;;  %s821_s8 = scalar_lea.hbm %s820_s24, 8  ;;  %s825_s7 = scalar_lea.hbm %s1088_s5, 16 }
  0x2c   : > { %p822_p1 = scmp.ne.s32.totalorder %s820_s24, %s821_s8  ;;  %p826_p11 = scmp.lt.s32.totalorder %s820_s24, %s1088_s5 }
  0x2d   : > { %421 = vmatpush.bf16.msra.mxu0 %v621_v6  ;;  %p827_p12 = scmp.lt.s32.totalorder %s825_s7, %s821_s8 }
  0x2e   : > { %p823_p3 = pnand %p822_p1, %p1003_p2 }
  0x2f   : > { %p828_p13 = por %p827_p12, %p826_p11 }
  0x30   : > { %p824_p7 = pneg %p823_p3 }
  0x31   : > { %422 = vmatpush.bf16.msra.mxu0 %v620_v7 }
  0x32   : > { %p829_p0 = pnand %p828_p13, %p824_p7 }
  0x35   : > { %423 = vmatpush.bf16.msra.mxu0 %v619_v10 }
  0x39   : > { %424 = vmatpush.bf16.msra.mxu0 %v618_v11 }
  0x3d   : > { %425 = vmatpush.bf16.msra.mxu0 %v617_v13 }
  0x41   : > { %426 = vmatpush.bf16.msra.mxu0 %v616_v16 }
  0x45   : > { %427 = vmatpush.bf16.msra.mxu0 %v615_v19 }
  0x9b   : > { %v314_v1 = vpop.xlane.xlu0 %313 }
  0x9c   : > { %v315_v2 = vmul.f32 0.0078125, %v314_v1 }
  0x9e   : > { %v316_v3 = vsub.f32 %v312_v0, %v315_v2 }
  0xa0   : > { %v317_v4 = vmul.f32 %v316_v3, %v316_v3 }
  0xa2   : > { %318 = vadd.xlane.f32.xlu0 %v317_v4 }
 0x115   : > { %v319_v8 = vpop.xlane.xlu0 %318 }
 0x116   : > { %v320_v9 = vmul.f32 0.007874016, %v319_v8 }
 0x118   : > { %711 = vrsqrt.f32 %v320_v9  ;;  %vm328_vm0 = vcmp.eq.f32.partialorder %v320_v9, inf  ;;  %v331_v22 = vand.u32 2147483648, %v320_v9  ;;  %vm330_vm1 = vcmp.eq.f32.partialorder %v320_v9, 0.0 }
 0x11e   : > { %v712_v12 = vpop.eup %711 }
 0x11f   : > { %v322_v14 = vmul.f32 %v712_v12, %v320_v9 }
 0x121   : > { %v323_v15 = vmul.f32 %v712_v12, %v322_v14 }
 0x123   : > { %v324_v17 = vmul.f32 0.5, %v323_v15 }
 0x125   : > { %v325_v18 = vsub.f32 1.5, %v324_v17 }
 0x127   : > { %v326_v20 = vmul.f32 %v712_v12, %v325_v18 }
 0x129   : > { %v327_v21 = vmul.f32 %v326_v20, %v320_v9 }
 0x12b   : > { %v329_v23 = vsel %vm328_vm0, %v320_v9, %v327_v21 }
 0x12c   : > { %v332_v24 = vsel %vm330_vm1, %v331_v22, %v329_v23 }
 0x12d   : > { %v333_v25 = vadd.f32 1e-06, %v332_v24 }
 0x12f   : > { %713 = vrcp.f32 %v333_v25 }
 0x135   : > { %v714_v26 = vpop.eup %713 }
 0x136   : > { %v335_v27 = vmul.f32 %v714_v26, %v333_v25 }
 0x138   : > { %v336_v29 = vsub.f32 2.0, %v335_v27 }
 0x13a   : > { %v337_v30 = vmul.f32 %v714_v26, %v336_v29 }
 0x13c   : > { %v342_v31 = vmul.f32 %v708_v28, %v337_v30 }
 0x13e   : > { %v343_v33 = vmul.f32 %v342_v31, %v316_v3 }
 0x140   : > { %v348_v34 = vadd.f32 %v709_v32, %v343_v33 }
 0x142   : > { %v349_v35 = vpack.c.bf16 %v348_v34, %v348_v34 }
 0x144   : > { %350 = vst [vmem:[#allocation2] sm:$0xf] %v349_v35 }
 0x14b   : > { %v351_v36 = vld [vmem:[#allocation2] sm:$0xf] }
 0x14c   : > { %428 = vmatmul.bf16.vlgmr.msra.gmra.mxu0 %v351_v36 }
 0x1c9   : > { %v429_v38 = vpop.f32.mrf.mxu0 }
 0x1ca   : > { %v430_v39 = vadd.f32 %v710_v37, %v429_v38 }
 0x1cc   : > { %v434_v40 = vadd.f32 %v430_v39, %v312_v0 }
 0x1ce   : > { %435 = vst [vmem:[%s304_s14] sm:$0xff] %v434_v40 }
 0x1cf   : > { %832 = shalt.err (!%p829_p0)
}
 0x1d0   : > { %633 = dma.vmem_to_hbm [thread:$0]  (%p1003_p2), %s451_s15, 128, %s453_s16, %s437_s21  }
 0x1d1   : > { %v431_v41 = vpop.f32.mrf.mxu0 }
 0x1d2 PF: > { %s464_s25 = sand.u32 1, %s871_s18   ;;  %p647_p4 = pnand %p571_p8, %p974_p5 }
 0x1d3   : > { %s465_s10 = scalar_lea.sflag [#allocation5], %s464_s25 }
 0x1d4   : > { %p648_p6 = pneg %p647_p4 }
 0x1d6   : > { %866 = dma.done.wait (%p648_p6), %s465_s10, 128  }
 0x1d7   : > { %868 = vsyncadd (%p648_p6), %s465_s10, 4294967168  ;;  %s22_s23 = sadd.s32 1, %s891_s23   ;;  %s1094_s18 = smov %s875_s19 }
 0x1d8   : > { %p19_p9 = scmp.ge.s32.totalorder %s22_s23, 4   ;;  %s1095_s19 = smov %s879_s20 }
 0x1d9   : > { %s1096_s20 = smov %s1013_s9  ;;  %s1097_s21 = smov %s887_s22 }
 0x1da   : > { %s1098_s22 = smov %s1100_s17  ;;  %21 = sbr.rel (!%p19_p9) target bundleno = 7 (0x7), region = 101 }
 0x1df   :  { %471 = vsyncpa [#allocation4], 1 }
 0x1e0   :  { %473 = vsyncpa [#allocation4 + $0x1], 1 }
 0x1e1   :  { %474 = vsyncpa [#allocation7], 1 }
 0x1e2   :  { %475 = vsyncpa [#allocation5], 1 }
 0x1e3   :  { %477 = vsyncpa [#allocation5 + $0x1], 1 }

</bundles_post_ra>
